<compile_context>
chip_gen: v7x
topology: tpu7x:2x2x1
jax: 0.10.0
libtpu: 0.0.40
codegen_flags: <defaults>
</compile_context>

<pallas_src>
import functools
import math

import jax
import jax.numpy as jnp
from jax.experimental import pallas as pl
from jax.experimental.pallas import tpu as pltpu


def _elu(x):
    # ELU(alpha=1): x if x > 0 else exp(x) - 1
    return jnp.where(x > 0, x, jnp.exp(x) - 1.0)


def _lsa_kernel(x_ref, wqkv_ref, bqkv_ref, wd_ref, bd_ref, gamma_ref, beta_ref,
                out_ref, *, n_heads, head_dim, ln_eps):
    Bb, S, H = x_ref.shape
    d = head_dim
    rows = Bb * S

    # Merge (Bb, S) into one MXU M-dim; keep an f32 copy for residual/LayerNorm.
    x_f32 = x_ref[...].reshape(rows, H).astype(jnp.float32)
    x_bf16 = x_f32.astype(jnp.bfloat16)

    # Fused QKV projection: bf16 operands, f32 accumulation on the MXU.
    qkv = jnp.dot(x_bf16, wqkv_ref[...],
                  preferred_element_type=jnp.float32) + bqkv_ref[...]   # (rows, 3H)

    # TODO(synk): for large n_heads / H move heads onto an "arbitrary" grid axis and
    # stream per-head weights; a static unroll is fine for small n_heads.
    ctx_heads = []
    for h in range(n_heads):
        q = qkv[:, h * d:(h + 1) * d]
        k = qkv[:, H + h * d:H + (h + 1) * d]
        v = qkv[:, 2 * H + h * d:2 * H + (h + 1) * d]

        eq = _elu(q)
        ek = _elu(k)
        # Per-token L2 normalization over the head dim (rsqrt -> EUP slot).
        # NOTE: rsqrt of an exactly-zero row would be inf -- matches the reference.
        nq = eq * jax.lax.rsqrt(jnp.sum(eq * eq, axis=-1, keepdims=True))
        nk = ek * jax.lax.rsqrt(jnp.sum(ek * ek, axis=-1, keepdims=True))

        nq3 = nq.reshape(Bb, S, d).astype(jnp.bfloat16)
        nk3 = nk.reshape(Bb, S, d).astype(jnp.bfloat16)
        v3 = v.reshape(Bb, S, d).astype(jnp.bfloat16)

        # Linear-attention order: build the (d x d) summary first.  The contraction
        # over s is expressed directly so dot_general folds the transpose into the
        # MXU operand (no materialized swapaxes).
        kv = jnp.einsum('bsd,bse->bde', nk3, v3,
                        preferred_element_type=jnp.float32)              # (Bb, d, d)
        ctx = jnp.einsum('bsd,bde->bse', nq3, kv.astype(jnp.bfloat16),
                         preferred_element_type=jnp.float32)             # (Bb, S, d)
        ctx_heads.append(ctx.reshape(rows, d))

    # Heads concatenated lane-wise -> ONE (rows,H)@(H,H) output projection.
    # (1/sqrt(d) is already folded into wd wrapper-side.)
    ctx_all = jnp.concatenate(ctx_heads, axis=-1).astype(jnp.bfloat16)
    proj = jnp.dot(ctx_all, wd_ref[...], preferred_element_type=jnp.float32)

    # dense bias + residual + LayerNorm (all f32).
    y = proj + bd_ref[...] + x_f32
    mu = jnp.mean(y, axis=-1, keepdims=True)
    yc = y - mu
    var = jnp.mean(yc * yc, axis=-1, keepdims=True)
    y_ln = yc * jax.lax.rsqrt(var + ln_eps) * gamma_ref[...] + beta_ref[...]

    out_ref[...] = y_ln.reshape(Bb, S, H).astype(out_ref.dtype)


def prepare_weights(params, *, n_heads):
    """Layer-constant weight prep; call ONCE, outside the per-call path."""
    H = params['w_q'].shape[0]
    d = H // n_heads
    # Fused QKV weight: torch Linear weights are (out, in) -> transpose to (in, out)
    # and concatenate along the output dim: (H, 3H) with column order [q | k | v].
    w_qkv = jnp.concatenate(
        [params['w_q'].T, params['w_k'].T, params['w_v'].T], axis=1)
    b_qkv = jnp.concatenate(
        [params['b_q'], params['b_k'], params['b_v']]).reshape(1, 3 * H)
    # Fold the 1/sqrt(d) context scale into the (layer-constant) dense weight.
    w_dense = params['w_dense'].T * (1.0 / math.sqrt(d))                 # (H, H)
    return {
        'w_qkv': w_qkv.astype(jnp.bfloat16),
        'b_qkv': b_qkv.astype(jnp.float32),
        'w_dense': w_dense.astype(jnp.bfloat16),
        'b_dense': params['b_dense'].reshape(1, H).astype(jnp.float32),
        'gamma': params['gamma'].reshape(1, H).astype(jnp.float32),
        'beta': params['beta'].reshape(1, H).astype(jnp.float32),
    }


def _default_block_b(B):
    if B <= 1:
        return 1
    # Largest divisor of B that still gives >= 2 grid steps (pipelining + megacore).
    for bb in range(B // 2, 0, -1):
        if B % bb == 0:
            return bb
    return 1


def linear_self_attention_forward(input_tensor, attention_mask, prepared, *,
                                  n_heads, layer_norm_eps=1e-12, block_b=None):
    """Pallas forward of LinearSelfAttention (eval mode: dropouts are identity)."""
    del attention_mask  # PyTorch forward never reads it.
    B, S, H = input_tensor.shape
    assert H % n_heads == 0
    d = H // n_heads
    if block_b is None:
        block_b = _default_block_b(B)
    assert B % block_b == 0

    # VMEM budget: resident bf16 weights + double-buffered f32 in/out blocks.
    weight_bytes = (prepared['w_qkv'].size + prepared['w_dense'].size) * 2
    block_bytes = 2 * 2 * block_b * S * H * 4
    vmem_limit = int(min(max(4 * (weight_bytes + block_bytes), 32 * 1024 * 1024),
                         56 * 1024 * 1024))   # stay below v7x's 64 MiB physical VMEM

    const = lambda shp: pl.BlockSpec(shp, lambda b: (0,) * len(shp))

    kernel = functools.partial(_lsa_kernel, n_heads=n_heads, head_dim=d,
                               ln_eps=layer_norm_eps)

    # TODO(synk): for production (lane-aligned) shapes keep input/output in bf16 and
    # single-buffer the grid-invariant weight specs to shave VMEM on v7x.
    return pl.pallas_call(
        kernel,
        out_shape=jax.ShapeDtypeStruct((B, S, H), jnp.float32),
        grid_spec=pltpu.PrefetchScalarGridSpec(
            num_scalar_prefetch=0,
            grid=(B // block_b,),
            in_specs=[
                pl.BlockSpec((block_b, S, H), lambda b: (b, 0, 0)),   # x
                const((H, 3 * H)),                                    # fused Wqkv^T (bf16)
                const((1, 3 * H)),                                    # fused qkv bias
                const((H, H)),                                        # Wdense^T / sqrt(d) (bf16)
                const((1, H)),                                        # b_dense
                const((1, H)), const((1, H)),                         # LayerNorm gamma, beta
            ],
            out_specs=pl.BlockSpec((block_b, S, H), lambda b: (b, 0, 0)),
        ),
        compiler_params=pltpu.CompilerParams(
            dimension_semantics=("parallel",),
            vmem_limit_bytes=vmem_limit),
    )(input_tensor, prepared['w_qkv'], prepared['b_qkv'],
      prepared['w_dense'], prepared['b_dense'],
      prepared['gamma'], prepared['beta'])


def reference_forward(input_tensor, attention_mask, params, *,
                      n_heads, layer_norm_eps=1e-12):
    """Pure-JAX f32 transcription of LinearSelfAttention.forward (validation)."""
    del attention_mask
    B, S, H = input_tensor.shape
    d = H // n_heads
    x = input_tensor
    q = x @ params['w_q'].T + params['b_q']
    k = x @ params['w_k'].T + params['b_k']
    v = x @ params['w_v'].T + params['b_v']
    qh = q.reshape(B, S, n_heads, d).transpose(0, 2, 1, 3)    # (B, nh, S, d)
    kh = k.reshape(B, S, n_heads, d).transpose(0, 2, 3, 1)    # (B, nh, d, S)
    vh = v.reshape(B, S, n_heads, d).transpose(0, 2, 1, 3)    # (B, nh, S, d)
    eq = _elu(qh)
    ek = _elu(kh)
    q_inv = jax.lax.rsqrt(jnp.sum(eq * eq, axis=3))           # (B, nh, S)
    k_inv = jax.lax.rsqrt(jnp.sum(ek * ek, axis=2))           # (B, nh, S)
    nq = eq * q_inv[..., None]
    nk = ek * k_inv[:, :, None, :]
    ctx = jnp.matmul(nq, jnp.matmul(nk, vh)) / math.sqrt(d)   # (B, nh, S, d)
    ctx = ctx.transpose(0, 2, 1, 3).reshape(B, S, H)
    hs = ctx @ params['w_dense'].T + params['b_dense']
    y = hs + x
    mu = y.mean(-1, keepdims=True)
    var = ((y - mu) ** 2).mean(-1, keepdims=True)
    return (y - mu) * jax.lax.rsqrt(var + layer_norm_eps) * params['gamma'] + params['beta']


def init_params(key, hidden_size):
    """nn.Linear-style U(-1/sqrt(H), 1/sqrt(H)) weights; near-identity LayerNorm affine."""
    stdv = 1.0 / math.sqrt(hidden_size)
    keys = jax.random.split(key, 10)
    u = lambda k, shape: jax.random.uniform(k, shape, jnp.float32, -stdv, stdv)
    return {
        'w_q': u(keys[0], (hidden_size, hidden_size)), 'b_q': u(keys[1], (hidden_size,)),
        'w_k': u(keys[2], (hidden_size, hidden_size)), 'b_k': u(keys[3], (hidden_size,)),
        'w_v': u(keys[4], (hidden_size, hidden_size)), 'b_v': u(keys[5], (hidden_size,)),
        'w_dense': u(keys[6], (hidden_size, hidden_size)), 'b_dense': u(keys[7], (hidden_size,)),
        'gamma': 1.0 + 0.1 * jax.random.normal(keys[8], (hidden_size,), jnp.float32),
        'beta': 0.1 * jax.random.normal(keys[9], (hidden_size,), jnp.float32),
    }


if __name__ == "__main__":
    B, S, H, NH = 2, 8, 32, 2
    LN_EPS = 1e-12

    root = jax.random.PRNGKey(0)
    k_x, k_p = jax.random.split(root)

    params = init_params(k_p, H)
    x = jax.random.normal(k_x, (B, S, H), jnp.float32)
    # attention_mask is part of the PyTorch signature but never used in forward.
    attention_mask = jnp.zeros((B, 1, 1, S), jnp.float32)

    # Layer-constant weight prep: done once, outside the per-call path.
    prepared = prepare_weights(params, n_heads=NH)

    out = linear_self_attention_forward(x, attention_mask, prepared,
                                        n_heads=NH, layer_norm_eps=LN_EPS)
    out = jax.block_until_ready(out)

    ref = reference_forward(x, attention_mask, params,
                            n_heads=NH, layer_norm_eps=LN_EPS)
    assert out.shape == (B, S, H)
    max_err = jnp.max(jnp.abs(out - ref))
    # bf16 MXU operands with f32 accumulation -> tolerance loosened vs f32 reference.
    assert jnp.allclose(out, ref, atol=5e-2, rtol=5e-2), (
        f"mismatch vs reference, max abs err {max_err}")

    print("KERNEL_OK")
</pallas_src>

<mosaic_0001>
module attributes {stable_mosaic.version = 11 : i64} {
  func.func @_lsa_kernel(%arg0: i32, %arg1: memref<1x8x32xf32, #tpu.memory_space<vmem>>, %arg2: memref<32x96xbf16, #tpu.memory_space<vmem>>, %arg3: memref<1x96xf32, #tpu.memory_space<vmem>>, %arg4: memref<32x32xbf16, #tpu.memory_space<vmem>>, %arg5: memref<1x32xf32, #tpu.memory_space<vmem>>, %arg6: memref<1x32xf32, #tpu.memory_space<vmem>>, %arg7: memref<1x32xf32, #tpu.memory_space<vmem>>, %arg8: memref<1x8x32xf32, #tpu.memory_space<vmem>>) attributes {dimension_semantics = [#tpu.dimension_semantics<parallel>], iteration_bounds = array<i64: 2>, scalar_prefetch = 0 : i64, scratch_operands = 0 : i64, tpu.core_type = #tpu.core_type<tc>, window_params = [{transform_indices = @transform_0, window_bounds = array<i64: 1, 8, 32>}, {pipeline_mode = #tpu.pipeline_mode<synchronous>, transform_indices = @transform_1, window_bounds = array<i64: 32, 96>}, {pipeline_mode = #tpu.pipeline_mode<synchronous>, transform_indices = @transform_2, window_bounds = array<i64: 1, 96>}, {pipeline_mode = #tpu.pipeline_mode<synchronous>, transform_indices = @transform_3, window_bounds = array<i64: 32, 32>}, {pipeline_mode = #tpu.pipeline_mode<synchronous>, transform_indices = @transform_4, window_bounds = array<i64: 1, 32>}, {pipeline_mode = #tpu.pipeline_mode<synchronous>, transform_indices = @transform_5, window_bounds = array<i64: 1, 32>}, {pipeline_mode = #tpu.pipeline_mode<synchronous>, transform_indices = @transform_6, window_bounds = array<i64: 1, 32>}, {transform_indices = @transform_7, window_bounds = array<i64: 1, 8, 32>}]} {
    %c0 = arith.constant 0 : index
    %c0_0 = arith.constant 0 : index
    %c0_1 = arith.constant 0 : index
    %0 = vector.load %arg1[%c0, %c0_0, %c0_1] : memref<1x8x32xf32, #tpu.memory_space<vmem>>, vector<1x8x32xf32>
    %1 = vector.shape_cast %0 : vector<1x8x32xf32> to vector<8x32xf32>
    %2 = arith.truncf %1 : vector<8x32xf32> to vector<8x32xbf16>
    %c0_2 = arith.constant 0 : index
    %c0_3 = arith.constant 0 : index
    %3 = vector.load %arg2[%c0_2, %c0_3] : memref<32x96xbf16, #tpu.memory_space<vmem>>, vector<32x96xbf16>
    %cst = arith.constant dense<0.000000e+00> : vector<8x96xf32>
    %4 = tpu.matmul %2, %3, %cst {dimension_numbers = #tpu.dot_dimension_numbers<[1], [0], [0], [1], [0, 0, 1, 1], [], []>} : vector<8x32xbf16>, vector<32x96xbf16>, vector<8x96xf32> -> vector<8x96xf32>
    %c0_4 = arith.constant 0 : index
    %c0_5 = arith.constant 0 : index
    %5 = vector.load %arg3[%c0_4, %c0_5] : memref<1x96xf32, #tpu.memory_space<vmem>>, vector<1x96xf32>
    %6 = vector.broadcast %5 : vector<1x96xf32> to vector<8x96xf32>
    %7 = arith.addf %4, %6 : vector<8x96xf32>
    %8 = vector.extract_strided_slice %7 {offsets = [0, 0], sizes = [8, 16], strides = [1, 1]} : vector<8x96xf32> to vector<8x16xf32>
    %9 = vector.extract_strided_slice %7 {offsets = [0, 32], sizes = [8, 16], strides = [1, 1]} : vector<8x96xf32> to vector<8x16xf32>
    %10 = vector.extract_strided_slice %7 {offsets = [0, 64], sizes = [8, 16], strides = [1, 1]} : vector<8x96xf32> to vector<8x16xf32>
    %cst_6 = arith.constant 0.000000e+00 : f32
    %11 = vector.broadcast %cst_6 : f32 to vector<8x16xf32>
    %12 = arith.cmpf ogt, %8, %11 : vector<8x16xf32>
    %13 = math.exp %8 : vector<8x16xf32>
    %cst_7 = arith.constant 1.000000e+00 : f32
    %14 = vector.broadcast %cst_7 : f32 to vector<8x16xf32>
    %15 = arith.subf %13, %14 : vector<8x16xf32>
    %16 = arith.select %12, %8, %15 : vector<8x16xi1>, vector<8x16xf32>
    %cst_8 = arith.constant 0.000000e+00 : f32
    %17 = vector.broadcast %cst_8 : f32 to vector<8x16xf32>
    %18 = arith.cmpf ogt, %9, %17 : vector<8x16xf32>
    %19 = math.exp %9 : vector<8x16xf32>
    %cst_9 = arith.constant 1.000000e+00 : f32
    %20 = vector.broadcast %cst_9 : f32 to vector<8x16xf32>
    %21 = arith.subf %19, %20 : vector<8x16xf32>
    %22 = arith.select %18, %9, %21 : vector<8x16xi1>, vector<8x16xf32>
    %23 = arith.mulf %16, %16 : vector<8x16xf32>
    %cst_10 = arith.constant dense<0.000000e+00> : vector<8xf32>
    %24 = vector.multi_reduction <add>, %23, %cst_10 [1] : vector<8x16xf32> to vector<8xf32>
    %25 = vector.shape_cast %24 : vector<8xf32> to vector<8x1xf32>
    %26 = math.rsqrt %25 : vector<8x1xf32>
    %27 = vector.broadcast %26 : vector<8x1xf32> to vector<8x16xf32>
    %28 = arith.mulf %16, %27 : vector<8x16xf32>
    %29 = arith.mulf %22, %22 : vector<8x16xf32>
    %cst_11 = arith.constant dense<0.000000e+00> : vector<8xf32>
    %30 = vector.multi_reduction <add>, %29, %cst_11 [1] : vector<8x16xf32> to vector<8xf32>
    %31 = vector.shape_cast %30 : vector<8xf32> to vector<8x1xf32>
    %32 = math.rsqrt %31 : vector<8x1xf32>
    %33 = vector.broadcast %32 : vector<8x1xf32> to vector<8x16xf32>
    %34 = arith.mulf %22, %33 : vector<8x16xf32>
    %35 = vector.shape_cast %28 : vector<8x16xf32> to vector<1x8x16xf32>
    %36 = arith.truncf %35 : vector<1x8x16xf32> to vector<1x8x16xbf16>
    %37 = vector.shape_cast %34 : vector<8x16xf32> to vector<1x8x16xf32>
    %38 = arith.truncf %37 : vector<1x8x16xf32> to vector<1x8x16xbf16>
    %39 = vector.shape_cast %10 : vector<8x16xf32> to vector<1x8x16xf32>
    %40 = arith.truncf %39 : vector<1x8x16xf32> to vector<1x8x16xbf16>
    "tpu.trace_start"() <{level = 10 : i32, message = "bsd,bse->bde"}> : () -> ()
    %cst_12 = arith.constant dense<0.000000e+00> : vector<1x16x16xf32>
    %41 = tpu.matmul %38, %40, %cst_12 {dimension_numbers = #tpu.dot_dimension_numbers<[1], [1], [2], [2], [0, 0, 0, 2, 1, 2], [0], [0]>} : vector<1x8x16xbf16>, vector<1x8x16xbf16>, vector<1x16x16xf32> -> vector<1x16x16xf32>
    "tpu.trace_stop"() : () -> ()
    %42 = arith.truncf %41 : vector<1x16x16xf32> to vector<1x16x16xbf16>
    "tpu.trace_start"() <{level = 10 : i32, message = "bsd,bde->bse"}> : () -> ()
    %cst_13 = arith.constant dense<0.000000e+00> : vector<1x8x16xf32>
    %43 = tpu.matmul %36, %42, %cst_13 {dimension_numbers = #tpu.dot_dimension_numbers<[2], [1], [1], [2], [0, 0, 0, 1, 1, 2], [0], [0]>} : vector<1x8x16xbf16>, vector<1x16x16xbf16>, vector<1x8x16xf32> -> vector<1x8x16xf32>
    "tpu.trace_stop"() : () -> ()
    %44 = vector.shape_cast %43 : vector<1x8x16xf32> to vector<8x16xf32>
    %45 = vector.extract_strided_slice %7 {offsets = [0, 16], sizes = [8, 16], strides = [1, 1]} : vector<8x96xf32> to vector<8x16xf32>
    %46 = vector.extract_strided_slice %7 {offsets = [0, 48], sizes = [8, 16], strides = [1, 1]} : vector<8x96xf32> to vector<8x16xf32>
    %47 = vector.extract_strided_slice %7 {offsets = [0, 80], sizes = [8, 16], strides = [1, 1]} : vector<8x96xf32> to vector<8x16xf32>
    %cst_14 = arith.constant 0.000000e+00 : f32
    %48 = vector.broadcast %cst_14 : f32 to vector<8x16xf32>
    %49 = arith.cmpf ogt, %45, %48 : vector<8x16xf32>
    %50 = math.exp %45 : vector<8x16xf32>
    %cst_15 = arith.constant 1.000000e+00 : f32
    %51 = vector.broadcast %cst_15 : f32 to vector<8x16xf32>
    %52 = arith.subf %50, %51 : vector<8x16xf32>
    %53 = arith.select %49, %45, %52 : vector<8x16xi1>, vector<8x16xf32>
    %cst_16 = arith.constant 0.000000e+00 : f32
    %54 = vector.broadcast %cst_16 : f32 to vector<8x16xf32>
    %55 = arith.cmpf ogt, %46, %54 : vector<8x16xf32>
    %56 = math.exp %46 : vector<8x16xf32>
    %cst_17 = arith.constant 1.000000e+00 : f32
    %57 = vector.broadcast %cst_17 : f32 to vector<8x16xf32>
    %58 = arith.subf %56, %57 : vector<8x16xf32>
    %59 = arith.select %55, %46, %58 : vector<8x16xi1>, vector<8x16xf32>
    %60 = arith.mulf %53, %53 : vector<8x16xf32>
    %cst_18 = arith.constant dense<0.000000e+00> : vector<8xf32>
    %61 = vector.multi_reduction <add>, %60, %cst_18 [1] : vector<8x16xf32> to vector<8xf32>
    %62 = vector.shape_cast %61 : vector<8xf32> to vector<8x1xf32>
    %63 = math.rsqrt %62 : vector<8x1xf32>
    %64 = vector.broadcast %63 : vector<8x1xf32> to vector<8x16xf32>
    %65 = arith.mulf %53, %64 : vector<8x16xf32>
    %66 = arith.mulf %59, %59 : vector<8x16xf32>
    %cst_19 = arith.constant dense<0.000000e+00> : vector<8xf32>
    %67 = vector.multi_reduction <add>, %66, %cst_19 [1] : vector<8x16xf32> to vector<8xf32>
    %68 = vector.shape_cast %67 : vector<8xf32> to vector<8x1xf32>
    %69 = math.rsqrt %68 : vector<8x1xf32>
    %70 = vector.broadcast %69 : vector<8x1xf32> to vector<8x16xf32>
    %71 = arith.mulf %59, %70 : vector<8x16xf32>
    %72 = vector.shape_cast %65 : vector<8x16xf32> to vector<1x8x16xf32>
    %73 = arith.truncf %72 : vector<1x8x16xf32> to vector<1x8x16xbf16>
    %74 = vector.shape_cast %71 : vector<8x16xf32> to vector<1x8x16xf32>
    %75 = arith.truncf %74 : vector<1x8x16xf32> to vector<1x8x16xbf16>
    %76 = vector.shape_cast %47 : vector<8x16xf32> to vector<1x8x16xf32>
    %77 = arith.truncf %76 : vector<1x8x16xf32> to vector<1x8x16xbf16>
    "tpu.trace_start"() <{level = 10 : i32, message = "bsd,bse->bde"}> : () -> ()
    %cst_20 = arith.constant dense<0.000000e+00> : vector<1x16x16xf32>
    %78 = tpu.matmul %75, %77, %cst_20 {dimension_numbers = #tpu.dot_dimension_numbers<[1], [1], [2], [2], [0, 0, 0, 2, 1, 2], [0], [0]>} : vector<1x8x16xbf16>, vector<1x8x16xbf16>, vector<1x16x16xf32> -> vector<1x16x16xf32>
    "tpu.trace_stop"() : () -> ()
    %79 = arith.truncf %78 : vector<1x16x16xf32> to vector<1x16x16xbf16>
    "tpu.trace_start"() <{level = 10 : i32, message = "bsd,bde->bse"}> : () -> ()
    %cst_21 = arith.constant dense<0.000000e+00> : vector<1x8x16xf32>
    %80 = tpu.matmul %73, %79, %cst_21 {dimension_numbers = #tpu.dot_dimension_numbers<[2], [1], [1], [2], [0, 0, 0, 1, 1, 2], [0], [0]>} : vector<1x8x16xbf16>, vector<1x16x16xbf16>, vector<1x8x16xf32> -> vector<1x8x16xf32>
    "tpu.trace_stop"() : () -> ()
    %81 = vector.shape_cast %80 : vector<1x8x16xf32> to vector<8x16xf32>
    %82 = tpu.concatenate %44, %81 in 1 : vector<8x16xf32>, vector<8x16xf32> -> vector<8x32xf32>
    %83 = arith.truncf %82 : vector<8x32xf32> to vector<8x32xbf16>
    %c0_22 = arith.constant 0 : index
    %c0_23 = arith.constant 0 : index
    %84 = vector.load %arg4[%c0_22, %c0_23] : memref<32x32xbf16, #tpu.memory_space<vmem>>, vector<32x32xbf16>
    %cst_24 = arith.constant dense<0.000000e+00> : vector<8x32xf32>
    %85 = tpu.matmul %83, %84, %cst_24 {dimension_numbers = #tpu.dot_dimension_numbers<[1], [0], [0], [1], [0, 0, 1, 1], [], []>} : vector<8x32xbf16>, vector<32x32xbf16>, vector<8x32xf32> -> vector<8x32xf32>
    %c0_25 = arith.constant 0 : index
    %c0_26 = arith.constant 0 : index
    %86 = vector.load %arg5[%c0_25, %c0_26] : memref<1x32xf32, #tpu.memory_space<vmem>>, vector<1x32xf32>
    %87 = vector.broadcast %86 : vector<1x32xf32> to vector<8x32xf32>
    %88 = arith.addf %85, %87 : vector<8x32xf32>
    %89 = arith.addf %88, %1 : vector<8x32xf32>
    %cst_27 = arith.constant dense<0.000000e+00> : vector<8xf32>
    %90 = vector.multi_reduction <add>, %89, %cst_27 [1] : vector<8x32xf32> to vector<8xf32>
    %91 = vector.shape_cast %90 : vector<8xf32> to vector<8x1xf32>
    %cst_28 = arith.constant 3.200000e+01 : f32
    %92 = vector.broadcast %cst_28 : f32 to vector<8x1xf32>
    %93 = arith.divf %91, %92 : vector<8x1xf32>
    %94 = vector.broadcast %93 : vector<8x1xf32> to vector<8x32xf32>
    %95 = arith.subf %89, %94 : vector<8x32xf32>
    %96 = arith.mulf %95, %95 : vector<8x32xf32>
    %cst_29 = arith.constant dense<0.000000e+00> : vector<8xf32>
    %97 = vector.multi_reduction <add>, %96, %cst_29 [1] : vector<8x32xf32> to vector<8xf32>
    %98 = vector.shape_cast %97 : vector<8xf32> to vector<8x1xf32>
    %cst_30 = arith.constant 3.200000e+01 : f32
    %99 = vector.broadcast %cst_30 : f32 to vector<8x1xf32>
    %100 = arith.divf %98, %99 : vector<8x1xf32>
    %cst_31 = arith.constant 9.99999996E-13 : f32
    %101 = vector.broadcast %cst_31 : f32 to vector<8x1xf32>
    %102 = arith.addf %100, %101 : vector<8x1xf32>
    %103 = math.rsqrt %102 : vector<8x1xf32>
    %104 = vector.broadcast %103 : vector<8x1xf32> to vector<8x32xf32>
    %105 = arith.mulf %95, %104 : vector<8x32xf32>
    %c0_32 = arith.constant 0 : index
    %c0_33 = arith.constant 0 : index
    %106 = vector.load %arg6[%c0_32, %c0_33] : memref<1x32xf32, #tpu.memory_space<vmem>>, vector<1x32xf32>
    %107 = vector.broadcast %106 : vector<1x32xf32> to vector<8x32xf32>
    %108 = arith.mulf %105, %107 : vector<8x32xf32>
    %c0_34 = arith.constant 0 : index
    %c0_35 = arith.constant 0 : index
    %109 = vector.load %arg7[%c0_34, %c0_35] : memref<1x32xf32, #tpu.memory_space<vmem>>, vector<1x32xf32>
    %110 = vector.broadcast %109 : vector<1x32xf32> to vector<8x32xf32>
    %111 = arith.addf %108, %110 : vector<8x32xf32>
    %112 = vector.shape_cast %111 : vector<8x32xf32> to vector<1x8x32xf32>
    %c0_36 = arith.constant 0 : index
    %c0_37 = arith.constant 0 : index
    %c0_38 = arith.constant 0 : index
    %113 = vector.load %arg8[%c0_36, %c0_37, %c0_38] : memref<1x8x32xf32, #tpu.memory_space<vmem>>, vector<1x8x32xf32>
    tpu.vector_store %arg8[%c0_36, %c0_37, %c0_38], %112 {strides = array<i32>} : memref<1x8x32xf32, #tpu.memory_space<vmem>>, vector<1x8x32xf32>,
    return
  }
  func.func @transform_0(%arg0: i32) -> (i32, i32, i32) {
    %c0_i32 = arith.constant 0 : i32
    %c0_i32_0 = arith.constant 0 : i32
    %c0_i32_1 = arith.constant 0 : i32
    return %arg0, %c0_i32, %c0_i32_0 : i32, i32, i32
  }
  func.func @transform_1(%arg0: i32) -> (i32, i32) {
    %c0_i32 = arith.constant 0 : i32
    %c0_i32_0 = arith.constant 0 : i32
    %c0_i32_1 = arith.constant 0 : i32
    return %c0_i32, %c0_i32_0 : i32, i32
  }
  func.func @transform_2(%arg0: i32) -> (i32, i32) {
    %c0_i32 = arith.constant 0 : i32
    %c0_i32_0 = arith.constant 0 : i32
    %c0_i32_1 = arith.constant 0 : i32
    return %c0_i32, %c0_i32_0 : i32, i32
  }
  func.func @transform_3(%arg0: i32) -> (i32, i32) {
    %c0_i32 = arith.constant 0 : i32
    %c0_i32_0 = arith.constant 0 : i32
    %c0_i32_1 = arith.constant 0 : i32
    return %c0_i32, %c0_i32_0 : i32, i32
  }
  func.func @transform_4(%arg0: i32) -> (i32, i32) {
    %c0_i32 = arith.constant 0 : i32
    %c0_i32_0 = arith.constant 0 : i32
    %c0_i32_1 = arith.constant 0 : i32
    return %c0_i32, %c0_i32_0 : i32, i32
  }
  func.func @transform_5(%arg0: i32) -> (i32, i32) {
    %c0_i32 = arith.constant 0 : i32
    %c0_i32_0 = arith.constant 0 : i32
    %c0_i32_1 = arith.constant 0 : i32
    return %c0_i32, %c0_i32_0 : i32, i32
  }
  func.func @transform_6(%arg0: i32) -> (i32, i32) {
    %c0_i32 = arith.constant 0 : i32
    %c0_i32_0 = arith.constant 0 : i32
    %c0_i32_1 = arith.constant 0 : i32
    return %c0_i32, %c0_i32_0 : i32, i32
  }
  func.func @transform_7(%arg0: i32) -> (i32, i32, i32) {
    %c0_i32 = arith.constant 0 : i32
    %c0_i32_0 = arith.constant 0 : i32
    %c0_i32_1 = arith.constant 0 : i32
    return %arg0, %c0_i32, %c0_i32_0 : i32, i32, i32
  }
}

</mosaic_0001>

<bundles_post_ra>
// kernel: tpu_custom_call.1
= control target key start
LH: loop header
LB: loop body
LE: loop exit
PB: predicated region body
PF: predicated region fallthrough
CT: control target
= control target key end

     0   :  { %12 = vsyncpa [#allocation3], 0  ;;  %s1555_s0 = inlined_call_operand.hbm [shape: f32[2,8,32], index: 0, kind: input, shape index: {}]   ;;  %s1556_s1 = inlined_call_operand.hbm [shape: bf16[32,96], index: 1, kind: input, shape index: {}]   ;;  %s1557_s2 = inlined_call_operand.vmem [shape: f32[1,96], index: 2, kind: input, shape index: {}]   ;;  %s1558_s3 = inlined_call_operand.hbm [shape: bf16[32,32], index: 3, kind: input, shape index: {}]   ;;  %s1559_s4 = inlined_call_operand.vmem [shape: f32[1,32], index: 4, kind: input, shape index: {}]   ;;  %s1560_s5 = inlined_call_operand.vmem [shape: f32[1,32], index: 5, kind: input, shape index: {}]   ;;  %s1561_s6 = inlined_call_operand.vmem [shape: f32[1,32], index: 6, kind: input, shape index: {}]   ;;  %s1562_s7 = inlined_call_operand.hbm [shape: f32[2,8,32], index: 7, kind: output, shape index: {}]  }
   0x1   :  { %14 = vsyncpa [#allocation3 + $0x1], 0 }
   0x2   :  { %15 = vsyncpa [#allocation6], 0 }
   0x3   :  { %16 = vsyncpa [#allocation4], 0 }
   0x4   :  { %18 = vsyncpa [#allocation4 + $0x1], 0  ;;  %s1265_s24 = smov 0   ;;  %s1267_s25 = smov 0  }
   0x5   :  { %s1269_s26 = smov 0   ;;  %s1271_s27 = smov 0  }
   0x6 LB: > { %s1286_s28 = sadd.s32 4294967295, %s1209_s27   ;;  %s874_s29 = sadd.s32 4294967294, %s1209_s27   ;;  %s1209_s27 = sphi %s1271_s27, %s1582_s27   ;;  %s1205_s26 = sphi %s1269_s26, %s1581_s26   ;;  %s1201_s25 = sphi %s1267_s25, %s1580_s25   ;;  %s1197_s24 = sphi %s1265_s24, %s1579_s24  }
   0x7   : > { %p44_p0 = scmp.ne.s32.totalorder %s1201_s25, %s1197_s24  ;;  %p1563_p1 = scmp.eq.s32.totalorder %s1286_s28, 0 }
   0x8   : > { %p200_p3 = scmp.eq.s32.totalorder %s874_s29, 1  ;;  %p875_p5 = scmp.ge.s32.totalorder %s1209_s27, 1 }
   0x9   : > { %p1295_p4 = por %p1563_p1, %p44_p0  ;;  %p207_p7 = scmp.lt.s32.totalorder %s1209_s27, 3 }
   0xa   : > { %p1300_p6 = por %p200_p3, %p44_p0  ;;  %s1211_s10 = smov [#allocation5]  }
   0xb   : > { %s1566_s30 = scalar_select %p1295_p4, 1, 0 }
   0xc   : > { %s1567_s8 = scalar_select %p1300_p6, 1, 0 }
   0xd   : > { %p1305_p8 = pnand %p875_p5, %p207_p7  ;;  %s219_s11 = sshll.u32 %s1211_s10, 4  ;;  %s1309_s11 = int_to_ptr.vmem [resolvable:$true] %s219_s11 }
   0xe   : > { %s1212_s13 = smov [#allocation7]   ;;  %s1053_s17 = scalar_lea.hbm %s1556_s1, 256 }
   0xf   : > { %p971_p9 = pneg %p1305_p8  ;;  %s235_s14 = sshll.u32 %s1212_s13, 4  ;;  %s1320_s14 = int_to_ptr.vmem [resolvable:$true] %s235_s14 }
  0x10   : > { %p1054_p12 = scmp.ne.s32.totalorder %s1556_s1, %s1053_s17  ;;  %p1060_p5 = scmp.lt.u32.totalorder %s1053_s17, %s1556_s1 }
  0x11   : > { %p1316_p11 = pnand %p971_p9, %p1563_p1 }
  0x13   : > { %p1055_p13 = pneg %p1316_p11 }
  0x15   : > { %p1056_p0 = pnand %p1055_p13, %p1054_p12 }
  0x17   : > { %p1057_p3 = pneg %p1056_p0 }
  0x19   : > { %p1062_p7 = pnand %p1060_p5, %p1057_p3 }
  0x1b   : > { %1065 = shalt.err (!%p1062_p7)
}
  0x1c   : > { %s1066_s22 = scalar_lea.vmem %s1309_s11, 256  ;;  %p1074_p2 = scmp.lt.s32.totalorder %s1309_s11, %s1309_s11 }
  0x1d   : > { %p1067_p9 = scmp.ne.s32.totalorder %s1309_s11, %s1066_s22  ;;  %p1075_p12 = scmp.lt.s32.totalorder %s1066_s22, %s1066_s22 }
  0x1f   : > { %p1069_p10 = pnand %p1067_p9, %p1055_p13  ;;  %p1076_p0 = por %p1075_p12, %p1074_p2 }
  0x21   : > { %p1070_p1 = pneg %p1069_p10 }
  0x23   : > { %p1077_p6 = pnand %p1076_p0, %p1070_p1 }
  0x25   : > { %1080 = shalt.err (!%p1077_p6)
}
  0x26   : > { %s1213_s23 = smov 64   ;;  %s1214_s29 = smov 4  }
  0x27   : > { %974 = dma.hbm_to_vmem [thread:$0]  (!%p1316_p11), %s1556_s1, 256, %s1309_s11, [#allocation6], %s1213_s23, %s1213_s23, %s1214_s29  }
  0x28   : > { %s1081_s17 = scalar_lea.hbm %s1558_s3, 256 }
  0x29   : > { %p1082_p2 = scmp.ne.s32.totalorder %s1558_s3, %s1081_s17  ;;  %p1088_p10 = scmp.lt.u32.totalorder %s1081_s17, %s1558_s3 }
  0x2b   : > { %p1084_p1 = pnand %p1082_p2, %p1055_p13 }
  0x2d   : > { %p1085_p6 = pneg %p1084_p1 }
  0x2f   : > { %p1090_p3 = pnand %p1088_p10, %p1085_p6 }
  0x31   : > { %1093 = shalt.err (!%p1090_p3)
}
  0x32   : > { %s1094_s11 = scalar_lea.vmem %s1320_s14, 256  ;;  %p1102_p12 = scmp.lt.s32.totalorder %s1320_s14, %s1320_s14 }
  0x33   : > { %p1095_p5 = scmp.ne.s32.totalorder %s1320_s14, %s1094_s11  ;;  %p1103_p0 = scmp.lt.s32.totalorder %s1094_s11, %s1094_s11 }
  0x35   : > { %p1097_p7 = pnand %p1095_p5, %p1055_p13  ;;  %p1104_p2 = por %p1103_p0, %p1102_p12 }
  0x37   : > { %p1098_p9 = pneg %p1097_p7 }
  0x39   : > { %p1105_p1 = pnand %p1104_p2, %p1098_p9 }
  0x3b   : > { %1108 = shalt.err (!%p1105_p1)
}
  0x3c   : > { %977 = dma.hbm_to_vmem [thread:$0]  (!%p1316_p11), %s1558_s3, 256, %s1320_s14, [#allocation6], %s1213_s23, %s1213_s23, %s1214_s29  }
  0x3d   : > { %s1375_s13 = sadd.s32 1, %s1209_s27   ;;  %s31_s12 = sadd.s32 1, %s1205_s26 }
  0x3e   : > { %s28_s15 = ssub.s32 %s1209_s27, %s1375_s13  ;;  %p38_p13 = scmp.ne.s32.totalorder %s1205_s26, %s1201_s25 }
  0x3f   : > { %p29_p6 = scmp.eq.s32.totalorder %s28_s15, 0  ;;  %p39_p10 = scmp.eq.s32.totalorder %s1209_s27, 0 }
  0x40   : > { %p1570_p3 = scmp.eq.s32.totalorder %s1286_s28, 1  ;;  %p988_p7 = scmp.lt.s32.totalorder %s1209_s27, 2 }
  0x41   : > { %s1391_s17 = scalar_select %p29_p6, %s1205_s26, %s31_s12  }
  0x42   : > { %p1385_p5 = por %p1570_p3, %p38_p13  ;;  %p40_p9 = por %p39_p10, %p38_p13 }
  0x43   : > { %s258_s18 = sand.u32 1, %s1205_s26   ;;  %s880_s14 = sshll.u32 %s1209_s27, 7 }
  0x44   : > { %s1571_s16 = scalar_select %p1385_p5, 1, 0 }
  0x45   : > { %s879_s19 = sshll.u32 %s258_s18, 3  ;;  %s1398_s20 = scalar_lea.hbm %s1555_s0, %s880_s14 }
  0x46   : > { %s262_s21 = scalar_lea.vmem [#allocation2], %s879_s19  ;;  %p1402_p11 = pnand %p988_p7, %p40_p9 }
  0x47   : > { %s269_s11 = sshll.u32 %s262_s21, 4  ;;  %s259_s10 = scalar_lea.sflag [#allocation3], %s258_s18  ;;  %s1400_s11 = int_to_ptr.vmem [resolvable:$true] %s269_s11 }
  0x48   : > { %s1109_s12 = scalar_lea.hbm %s1398_s20, 128  ;;  %p1111_p0 = pneg %p1402_p11 }
  0x49   : > { %p1110_p12 = scmp.ne.s32.totalorder %s1398_s20, %s1109_s12  ;;  %s1114_s14 = scalar_lea.hbm %s1555_s0, 256 }
  0x4a   : > { %p1115_p13 = scmp.lt.u32.totalorder %s1398_s20, %s1555_s0  ;;  %p1116_p6 = scmp.lt.u32.totalorder %s1114_s14, %s1109_s12 }
  0x4b   : > { %p1112_p2 = pnand %p1111_p0, %p1110_p12  ;;  %p1118_p3 = scmp.lt.u32.totalorder %s1109_s12, %s1398_s20 }
  0x4c   : > { %p1117_p10 = por %p1116_p6, %p1115_p13 }
  0x4d   : > { %p1113_p1 = pneg %p1112_p2 }
  0x4e   : > { %p1119_p7 = por %p1118_p3, %p1117_p10 }
  0x50   : > { %p1120_p9 = pnand %p1119_p7, %p1113_p1 }
  0x52   : > { %1123 = shalt.err (!%p1120_p9)
}
  0x53   : > { %s1124_s18 = scalar_lea.vmem %s1400_s11, 128  ;;  %s1215_s21 = smov [#allocation2]  }
  0x54   : > { %p1125_p12 = scmp.ne.s32.totalorder %s1400_s11, %s1124_s18  ;;  %s1129_s15 = sshll.u32 %s1215_s21, 4  ;;  %s1130_s15 = int_to_ptr.vmem [resolvable:$false] %s1129_s15 }
  0x55   : > { %s1131_s19 = scalar_lea.vmem %s1130_s15, 256  ;;  %p1132_p4 = scmp.lt.s32.totalorder %s1400_s11, %s1130_s15 }
  0x56   : > { %p1127_p2 = pnand %p1125_p12, %p1111_p0  ;;  %p1133_p13 = scmp.lt.s32.totalorder %s1131_s19, %s1124_s18 }
  0x58   : > { %p1128_p5 = pneg %p1127_p2  ;;  %p1134_p6 = por %p1133_p13, %p1132_p4 }
  0x5a   : > { %p1135_p10 = pnand %p1134_p6, %p1128_p5 }
  0x5c   : > { %1138 = shalt.err (!%p1135_p10)
}
  0x5d   : > { %981 = dma.hbm_to_vmem [thread:$0]  (!%p1402_p11), %s1398_s20, 128, %s1400_s11, %s259_s10  }
  0x5e   : > { %278 = sbr.rel (%p1305_p8) target bundleno = 2005 (0x7d5), region = 48  ;;  %s1434_s12 = sand.u32 (!%p1305_p8), 1, %s1201_s25  }
  0x5f   : > { %s882_s14 = sshll.u32 (!%p1305_p8), %s1434_s12, 3  ;;  %s281_s23 = scalar_lea.sflag (!%p1305_p8), [#allocation3], %s1434_s12 }
  0x60   : > { %s284_s29 = scalar_lea.vmem (!%p1305_p8), [#allocation2], %s882_s14  ;;  %p1573_p4 = scmp.ne.s32.totalorder (!%p1305_p8), %s1566_s30, 0 }
  0x65   : > { %1184 = dma.done.wait (%p1573_p4), %s281_s23, 128  }
  0x66   : > { %1186 = vsyncadd (%p1573_p4), %s281_s23, 4294967168  ;;  %p1574_p5 = scmp.eq.s32.totalorder %s1286_s28, 0 }
  0x68   : > { %1188 = dma.done.wait (%p1574_p5), [#allocation6], 512   ;;  %p1575_p8 = pmov %p1574_p5 }
  0x69   : > { %v1216_v0 = vmov 0.0   ;;  %vm1217_vm0 = vmmov 0   ;;  %v1037_v1 = vld [vmem:[#allocation5] sm:$0xff]   ;;  %v1038_v2 = vld [vmem:[#allocation5 + $0x8] sm:$0xff]   ;;  %v1454_v3 = vld [vmem:[%s284_s29] sm:$0xff]  ;;  %vm349_vm1 = vcmask 261120  }
  0x6a   : > { %1190 = vsyncadd (%p1575_p8), [#allocation6], 4294966784  ;;  %919 = vmatprep.subr.bf16.mxu0 %v1216_v0  ;;  %923 = vmatprep.mubr.msk.bf16.mxu0 %vm1217_vm0, %v1216_v0  ;;  %v325_v4 = vpack.c.bf16 %v1454_v3, %v1454_v3  ;;  %v886_v5 = vld [vmem:[%s1557_s2] ss:$0 sm:$0xff]  ;;  %s1218_s20 = smov 96   ;;  %s1219_s11 = smov 80  }
  0x6b   : > { %927 = vmatprep.subr.bf16.mxu1 %v1216_v0  ;;  %929 = vmatprep.mubr.msk.bf16.mxu1 %vm1217_vm0, %v1216_v0  ;;  %vm399_vm3 = vcmask 130048   ;;  %s1220_s22 = smov 64   ;;  %s1221_s10 = smov 48   ;;  %vm444_vm4 = vcmask 1043456   ;;  %vm440_vm5 = vcmask 64512   ;;  %v1039_v59 = vld [vmem:[#allocation7] sm:$0xff]  }
  0x6c   : > { %920 = vmatpush3.bf16.msra.mxu0 %v1037_v1  ;;  %s1222_s18 = smov 112   ;;  %v1040_v60 = vld [vmem:[#allocation7 + $0x8] sm:$0xff]   ;;  %s1223_s21 = smov 16  }
  0x6d   : > { %921 = vmatprep.subr.bf16.mxu0 %v1216_v0  ;;  %s772_s15 = scalar_lea.sflag [#allocation4], %s1434_s12  ;;  %p1576_p0 = scmp.ne.s32.totalorder %s1571_s16, 0 }
  0x70   : > { %922 = vmatpush3.bf16.msra.mxu0 %v1038_v2 }
  0x71   : > { %939 = vmatprep.subr.bf16.mxu0 %v1216_v0 }
  0x73   : > { %924 = vmatmul.mubr.msk.bf16.vlgmr.msra.gmra.mrb[0].mxu0 %vm349_vm1, %v325_v4 }
  0x74   : > { %941 = vmatprep.mubr.msk.bf16.mxu0 %vm1217_vm0, %v1216_v0 }
 0x146   : > { %v387_v6 = vpop.f32.mrb[0].mxu0 }
 0x147   : > { %v388_v7 = vadd.f32 %v886_v5, %v387_v6  ;;  %v925_v8 = vpop.f32.mrb[1].mxu0 }
 0x148   : > { %v390_v9 = vpop.f32.mrb[2].mxu0 }
 0x149   : > { %v394_v10 = vmul.f32 1.442695, %v388_v7  ;;  %v926_v11 = vpop.f32.mrb[3].mxu0  ;;  %vm393_vm2 = vcmp.gt.f32.partialorder %v388_v7, 0.0  ;;  %v416_v27 = vpack.c.bf16 %v388_v7, %v388_v7 }
 0x14b   : > { %1041 = vpow2.f32 %v394_v10 }
 0x155   : > { %v1042_v12 = vpop.eup %1041 }
 0x156   : > { %v890_v13 = vadd.f32 -1.0, %v1042_v12 }
 0x158   : > { %v1466_v14 = vsel %vm393_vm2, %v388_v7, %v890_v13 }
 0x159   : > { %v398_v15 = vmul.f32 %v1466_v14, %v1466_v14 }
 0x15b   : > { %406 = vrot.lane.b32.xlu0 %v398_v15, %s1218_s20  ;;  %v400_v35 = vsel %vm399_vm3, %v398_v15, 0.0 }
 0x15f   : > { %541 = vrot.lane.b32.xlu0 %v398_v15, %s1219_s11 }
 0x1cd   : > { %v407_v16 = vpop.permute.xlu0 %406 }
 0x1ce   : > { %v409_v17 = vsel %vm399_vm3, %v407_v16, 0.0 }
 0x1cf   : > { %410 = vadd.xlane.f32.xlu1 %v409_v17 }
 0x1d1   : > { %v542_v18 = vpop.permute.xlu0 %541 }
 0x1d2   : > { %v544_v19 = vsel %vm399_vm3, %v542_v18, 0.0 }
 0x1d3   : > { %545 = vadd.xlane.f32.xlu1 %v544_v19 }
 0x25c   : > { %v411_v20 = vpop.xlane.xlu1 %410 }
 0x25d   : > { %1043 = vrsqrt.f32 %v411_v20 }
 0x260   : > { %v546_v21 = vpop.xlane.xlu1 %545 }
 0x261   : > { %1045 = vrsqrt.f32 %v546_v21 }
 0x267   : > { %v1044_v22 = vpop.eup %1043 }
 0x268   : > { %v413_v23 = vmul.f32 %v1044_v22, %v1466_v14 }
 0x26a   : > { %v415_v24 = vpack.c.bf16 %v413_v23, %v413_v23 }
 0x26b   : > { %v1046_v25 = vpop.eup %1045 }
 0x26c   : > { %418 = vrot.lane.b32.xlu0 %v415_v24, %s1218_s20  ;;  %v548_v26 = vmul.f32 %v1046_v25, %v1466_v14  ;;  %s902_s20 = sshll.u32 %s1286_s28, 7  ;;  %s1224_s28 = smov [#allocation8]  }
 0x26e   : > { %v550_v28 = vpack.c.bf16 %v548_v26, %v548_v26 }
 0x270   : > { %438 = vrot.lane.b32.xlu0 %v416_v27, %s1220_s22  ;;  %552 = vrot.lane.b32.xlu1 %v550_v28, %s1219_s11  ;;  %s322_s11 = scalar_lea.vmem [#allocation8], %s882_s14  ;;  %s1143_s14 = sshll.u32 %s1224_s28, 4  ;;  %s1144_s14 = int_to_ptr.vmem [resolvable:$false] %s1143_s14 }
 0x271   : > { %s785_s22 = sshll.u32 %s322_s11, 4  ;;  %s1145_s23 = scalar_lea.vmem %s1144_s14, 256  ;;  %s1512_s22 = int_to_ptr.vmem [resolvable:$true] %s785_s22 }
 0x272   : > { %s1139_s19 = scalar_lea.vmem %s1512_s22, 128  ;;  %p1146_p7 = scmp.lt.s32.totalorder %s1512_s22, %s1144_s14 }
 0x273   : > { %p1140_p11 = scmp.ne.s32.totalorder %s1512_s22, %s1139_s19  ;;  %p1147_p9 = scmp.lt.s32.totalorder %s1145_s23, %s1139_s19 }
 0x274   : > { %571 = vrot.lane.b32.xlu0 %v416_v27, %s1221_s10  ;;  %v900_v27 = vld [vmem:[%s1561_s6] ss:$0 sm:$0xff] }
 0x275   : > { %p1141_p1 = pnand %p1140_p11, %p1576_p0  ;;  %p1148_p12 = por %p1147_p9, %p1146_p7 }
 0x277   : > { %p1142_p3 = pneg %p1141_p1 }
 0x279   : > { %p1149_p2 = pnand %p1148_p12, %p1142_p3 }
 0x2de   : > { %v419_v29 = vpop.permute.xlu0 %418 }
 0x2df   : > { %421 = vxpose.xlu0.c.b16.start.end [1/1] (short) (narrow) %v419_v29, 16 }
 0x2e2   : > { %v553_v30 = vpop.permute.xlu1 %552  ;;  %v439_v31 = vpop.permute.xlu0 %438 }
 0x2e3   : > { %555 = vxpose.xlu1.c.b16.start.end [1/1] (short) (narrow) %v553_v30, 16  ;;  %v446_v32 = vsel %vm444_vm4, %v439_v31, 0 }
 0x2e4   : > { %928 = vmatpush3.bf16.msra.mxu1 %v446_v32 }
 0x2e5   : > { %933 = vmatprep.subr.bf16.mxu1 %v1216_v0 }
 0x2e6   : > { %v572_v33 = vpop.permute.xlu0 %571 }
 0x2e7   : > { %v577_v34 = vsel %vm444_vm4, %v572_v33, 0 }
 0x2e8   : > { %533 = vrot.lane.b32.xlu0 %v398_v15, %s1222_s18  ;;  %940 = vmatpush3.bf16.msra.mxu0 %v577_v34 }
 0x2e9   : > { %951 = vmatprep.subr.bf16.mxu0 %v1216_v0 }
 0x2f0   : > { %401 = vadd.xlane.f32.xlu1 %v400_v35 }
 0x345   : > { %v429_v36 = vpop.trf.xlu0 }
 0x346   : > { %930 = vmatmul.mubr.msk.bf16.vlgmr.msra.gmra.mrb[0].mxu1 %vm440_vm5, %v429_v36 }
 0x347   : > { %935 = vmatprep.mubr.msk.bf16.mxu1 %vm1217_vm0, %v1216_v0 }
 0x349   : > { %v563_v37 = vpop.trf.xlu1 }
 0x34a   : > { %942 = vmatmul.mubr.msk.bf16.vlgmr.msra.gmra.mrb[4].mxu0 %vm440_vm5, %v563_v37 }
 0x34b   : > { %955 = vmatprep.mubr.msk.bf16.mxu0 %vm1217_vm0, %v1216_v0  ;;  %952 = vmatpush3.bf16.msra.mxu0 %v1039_v59 }
 0x34c   : > { %953 = vmatprep.subr.bf16.mxu0 %v1216_v0 }
 0x34f   : > { %954 = vmatpush3.bf16.msra.mxu0 %v1040_v60 }
 0x35a   : > { %v534_v38 = vpop.permute.xlu0 %533 }
 0x35b   : > { %v536_v39 = vsel %vm399_vm3, %v534_v38, 0.0 }
 0x35c   : > { %537 = vadd.xlane.f32.xlu0 %v536_v39 }
 0x37d   : > { %v402_v44 = vpop.xlane.xlu1 %401 }
 0x3e9   : > { %v538_v40 = vpop.xlane.xlu0 %537 }
 0x3ea   : > { %1047 = vrsqrt.f32 %v538_v40 }
 0x3eb   : > { %1049 = vrsqrt.f32 %v402_v44 }
 0x3f4   : > { %v1048_v41 = vpop.eup %1047 }
 0x3f5   : > { %v540_v42 = vmul.f32 %v1048_v41, %v1466_v14  ;;  %v1050_v45 = vpop.eup %1049 }
 0x3f6   : > { %v404_v48 = vmul.f32 %v1050_v45, %v1466_v14 }
 0x3f7   : > { %v549_v43 = vpack.c.bf16 %v540_v42, %v540_v42 }
 0x3f8   : > { %v414_v54 = vpack.c.bf16 %v404_v48, %v404_v48 }
 0x3f9   : > { %622 = vrot.lane.b32.xlu1 %v549_v43, %s1222_s18 }
 0x419   : > { %v482_v46 = vpop.f32.mrb[0].mxu1 }
 0x41a   : > { %v931_v47 = vpop.f32.mrb[1].mxu1 }
 0x41b   : > { %v485_v49 = vpop.f32.mrb[2].mxu1 }
 0x41c   : > { %v489_v50 = vpack.c.bf16 %v485_v49, %v482_v46  ;;  %v932_v51 = vpop.f32.mrb[3].mxu1 }
 0x41d   : > { %v613_v52 = vpop.f32.mrb[4].mxu0 }
 0x41e   : > { %934 = vmatpush3.bf16.msra.mxu1 %v489_v50  ;;  %v943_v53 = vpop.f32.mrb[5].mxu0 }
 0x41f   : > { %v616_v55 = vpop.f32.mrb[6].mxu0  ;;  %945 = vmatprep.subr.bf16.mxu1 %v1216_v0 }
 0x420   : > { %v620_v56 = vpack.c.bf16 %v616_v55, %v613_v52  ;;  %v944_v57 = vpop.f32.mrb[7].mxu0 }
 0x421   : > { %936 = vmatmul.mubr.msk.bf16.vlgmr.msra.gmra.mrb[4].mxu1 %vm399_vm3, %v414_v54 }
 0x422   : > { %946 = vmatpush3.bf16.msra.mxu1 %v620_v56  ;;  %947 = vmatprep.mubr.msk.bf16.mxu1 %vm1217_vm0, %v1216_v0  ;;  %v895_v0 = vld [vmem:[%s1559_s4] ss:$0 sm:$0xff] }
 0x46b   : > { %v623_v58 = vpop.permute.xlu1 %622 }
 0x46c   : > { %948 = vmatmul.mubr.msk.bf16.vlgmr.msra.gmra.mrb[8].mxu1 %vm399_vm3, %v623_v58 }
 0x4f4   : > { %v527_v61 = vpop.f32.mrb[4].mxu1 }
 0x4f5   : > { %v937_v62 = vpop.f32.mrb[5].mxu1 }
 0x4f6   : > { %v530_v63 = vpop.f32.mrb[6].mxu1 }
 0x4f7   : > { %v938_v1 = vpop.f32.mrb[7].mxu1 }
 0x53f   : > { %v661_v2 = vpop.f32.mrb[8].mxu1 }
 0x540   : > { %668 = vrot.lane.b32.xlu0 %v661_v2, %s1223_s21  ;;  %v949_v4 = vpop.f32.mrb[9].mxu1  ;;  %s1510_s21 = scalar_lea.hbm %s1562_s7, %s902_s20 }
 0x541   : > { %v664_v5 = vpop.f32.mrb[10].mxu1 }
 0x542   : > { %v950_v6 = vpop.f32.mrb[11].mxu1 }
 0x5b2   : > { %v669_v7 = vpop.permute.xlu0 %668 }
 0x5b3   : > { %v671_v8 = vsel %vm399_vm3, %v527_v61, %v669_v7 }
 0x5b4   : > { %v672_v9 = vpack.c.bf16 %v671_v8, %v671_v8 }
 0x5b6   : > { %956 = vmatmul.mubr.msk.bf16.vlgmr.msra.gmra.mrb[8].mxu0 %vm349_vm1, %v672_v9 }
 0x689   : > { %v733_v10 = vpop.f32.mrb[8].mxu0 }
 0x68a   : > { %v734_v11 = vadd.f32 %v895_v0, %v733_v10  ;;  %v957_v12 = vpop.f32.mrb[9].mxu0 }
 0x68b   : > { %v736_v13 = vpop.f32.mrb[10].mxu0 }
 0x68c   : > { %v958_v14 = vpop.f32.mrb[11].mxu0  ;;  %v739_v15 = vadd.f32 %v734_v11, %v1454_v3  ;;  %v899_v3 = vld [vmem:[%s1560_s5] ss:$0 sm:$0xff] }
 0x68e   : > { %v740_v16 = vsel %vm349_vm1, %v739_v15, 0.0 }
 0x68f   : > { %741 = vadd.xlane.f32.xlu1 %v740_v16 }
 0x71c   : > { %v742_v17 = vpop.xlane.xlu1 %741 }
 0x71d   : > { %v744_v18 = vmul.f32 0.03125, %v742_v17 }
 0x71f   : > { %v745_v19 = vsub.f32 %v739_v15, %v744_v18 }
 0x721   : > { %v746_v20 = vmul.f32 %v745_v19, %v745_v19 }
 0x723   : > { %v747_v21 = vsel %vm349_vm1, %v746_v20, 0.0 }
 0x724   : > { %748 = vadd.xlane.f32.xlu0 %v747_v21 }
 0x7b1   : > { %v749_v22 = vpop.xlane.xlu0 %748 }
 0x7b2   : > { %v750_v23 = vmul.f32 0.03125, %v749_v22 }
 0x7b4   : > { %v751_v24 = vadd.f32 1e-12, %v750_v23 }
 0x7b6   : > { %1051 = vrsqrt.f32 %v751_v24 }
 0x7c0   : > { %v1052_v25 = vpop.eup %1051 }
 0x7c1   : > { %v753_v26 = vmul.f32 %v1052_v25, %v745_v19 }
 0x7c3   : > { %v761_v28 = vmul.f32 %v899_v3, %v753_v26 }
 0x7c5   : > { %v769_v29 = vadd.f32 %v900_v27, %v761_v28 }
 0x7c7   : > { %770 = vst.msk [vmem:[%s322_s11] sm:$0xff] %vm349_vm1, %v769_v29 }
 0x7c8   : > { %1152 = shalt.err (!%p1149_p2)
}
 0x7c9   : > { %s1153_s12 = scalar_lea.hbm %s1510_s21, 128  ;;  %s1157_s9 = scalar_lea.hbm %s1562_s7, 256 }
 0x7ca   : > { %p1154_p13 = scmp.ne.s32.totalorder %s1510_s21, %s1153_s12  ;;  %p1158_p4 = scmp.lt.u32.totalorder %s1510_s21, %s1562_s7 }
 0x7cb   : > { %p1159_p5 = scmp.lt.u32.totalorder %s1157_s9, %s1153_s12  ;;  %p1161_p11 = scmp.lt.u32.totalorder %s1153_s12, %s1510_s21 }
 0x7cc   : > { %p1155_p6 = pnand %p1154_p13, %p1576_p0 }
 0x7cd   : > { %p1160_p8 = por %p1159_p5, %p1158_p4 }
 0x7ce   : > { %p1156_p10 = pneg %p1155_p6 }
 0x7cf   : > { %p1162_p1 = por %p1161_p11, %p1160_p8 }
 0x7d1   : > { %p1163_p3 = pnand %p1162_p1, %p1156_p10 }
 0x7d3   : > { %1166 = shalt.err (!%p1163_p3)
}
 0x7d4   : > { %969 = dma.vmem_to_hbm [thread:$0]  (%p1576_p0), %s1512_s22, 128, %s1510_s21, %s772_s15  }
 0x7d5 PF: > { %s797_s10 = sand.u32 1, %s1197_s24   ;;  %p1577_p7 = scmp.ne.s32.totalorder %s1567_s8, 0 }
 0x7d6   : > { %p1578_p9 = scmp.ge.s32.totalorder %s1209_s27, 2  ;;  %s798_s18 = scalar_lea.sflag [#allocation4], %s797_s10 }
 0x7d8   : > { %p983_p12 = pnand %p1578_p9, %p1577_p7 }
 0x7da   : > { %1192 = dma.done.wait (!%p983_p12), %s798_s18, 128  }
 0x7db   : > { %1194 = vsyncadd (!%p983_p12), %s798_s18, 4294967168  ;;  %p21_p2 = scmp.ge.s32.totalorder %s1375_s13, 4   ;;  %s1579_s24 = smov %s1201_s25 }
 0x7dc   : > { %s1580_s25 = smov %s1205_s26  ;;  %s1581_s26 = smov %s1391_s17 }
 0x7dd   : > { %s1582_s27 = smov %s1375_s13  ;;  %23 = sbr.rel (!%p21_p2) target bundleno = 6 (0x6), region = 101 }
 0x7e4   :  { %803 = vsyncpa [#allocation3], 1 }
 0x7e5   :  { %805 = vsyncpa [#allocation3 + $0x1], 1 }
 0x7e6   :  { %806 = vsyncpa [#allocation6], 1 }
 0x7e7   :  { %807 = vsyncpa [#allocation4], 1 }
 0x7e8   :  { %809 = vsyncpa [#allocation4 + $0x1], 1 }

</bundles_post_ra>
